<compile_context>
chip_gen: v6e
topology: v6e:2x2x1
jax: 0.10.0
libtpu: 0.0.40
codegen_flags: <defaults>
</compile_context>

<pallas_src>
import functools

import jax
import jax.numpy as jnp
from jax.experimental import pallas as pl
from jax.experimental.pallas import tpu as pltpu


def _round_up(x: int, m: int) -> int:
    return ((x + m - 1) // m) * m


def _vmem_capacity_bytes() -> int:
    try:
        return int(pltpu.get_tpu_info().vmem_capacity_bytes)
    except Exception:
        return 64 * 1024 * 1024  # conservative: v7x per-TensorCore VMEM


def _choose_tn(out_f: int) -> int:
    """Lane-dense N tile; prefer >=2 blocks along N so both v7x TCs get work."""
    n128 = _round_up(out_f, 128)
    for tn in (512, 256, 128):
        if n128 >= 2 * tn:
            return tn
    return min(n128, 512)


def _choose_tk(in_f: int, mm_dtype) -> int:
    """Whole-K when it fits (weight streams once, no K pipeline); else big tiles."""
    k128 = _round_up(in_f, 128)
    cap = 2048 if jnp.dtype(mm_dtype).itemsize <= 2 else 1024
    return k128 if k128 <= cap else cap


def _choose_tm(batch: int, sub: int) -> int:
    """Sublane-packed M tile; single block for small batches (x stays resident)."""
    b = _round_up(batch, sub)
    if b <= 512:
        return b
    best_tm, best_pad = 512, _round_up(b, 512) - b
    for tm in (448, 384, 320, 256):
        pad = _round_up(b, tm) - b
        if pad < best_pad:
            best_tm, best_pad = tm, pad
    return best_tm


def _fc_relu_kernel(x_ref, w_ref, b_ref, o_ref, acc_ref):
    """One (i, j, k) grid step: acc += x_tile @ wT_tile ; epilogue bias+ReLU."""
    k = pl.program_id(2)

    @pl.when(k == 0)
    def _():
        acc_ref[...] = jnp.zeros_like(acc_ref)

    # x_ref: [tm, tk], w_ref: [tk, tn] (weight pre-transposed once offline).
    acc_ref[...] += jnp.dot(x_ref[...], w_ref[...],
                            preferred_element_type=jnp.float32)

    @pl.when(k == pl.num_programs(2) - 1)
    def _():
        # Bias (1, tn) broadcasts over rows; ReLU on the f32 accumulator.
        o_ref[...] = jnp.maximum(acc_ref[...] + b_ref[...], 0.0).astype(o_ref.dtype)


def prepare_fc_params(weight, bias, mm_dtype=jnp.bfloat16):
    """One-time weight/bias preparation (do this at model load, not per call).

    Returns (w_t, b_p, meta) where w_t is the padded [K_p, N_p] matmul-dtype
    weight, b_p the padded (1, N_p) f32 bias, and meta the static tiling args.
    """
    out_f, in_f = weight.shape
    tn = _choose_tn(out_f)
    tk = _choose_tk(in_f, mm_dtype)
    N_p = _round_up(out_f, tn)
    K_p = _round_up(in_f, tk)

    # Cast first (halves transpose bytes for bf16), transpose to [K, N], pad.
    w_t = jnp.asarray(weight, dtype=mm_dtype).T
    if (in_f, out_f) != (K_p, N_p):
        w_t = jnp.pad(w_t, ((0, K_p - in_f), (0, N_p - out_f)))

    b_p = jnp.asarray(bias, dtype=jnp.float32).reshape(1, out_f)
    if out_f != N_p:
        b_p = jnp.pad(b_p, ((0, 0), (0, N_p - out_f)))

    meta = dict(out_f=out_f, tn=tn, tk=tk)
    return w_t, b_p, meta


@functools.partial(jax.jit, static_argnames=("out_f", "tn", "tk"))
def _fc_block_apply(x, w_p, b_p, *, out_f, tn, tk):
    """relu(x @ W.T + b) using the prepared (padded, [K,N]) weight."""
    B, in_f = x.shape
    K_p, N_p = w_p.shape
    mm_dtype = w_p.dtype
    sub = 16 if jnp.dtype(mm_dtype).itemsize <= 2 else 8

    tm = _choose_tm(B, sub)
    B_p = _round_up(B, tm)

    # Skip the pad/cast entirely when x is already tile-aligned in mm_dtype.
    if (B, in_f) == (B_p, K_p) and x.dtype == mm_dtype:
        x_p = x
    else:
        x_p = jnp.pad(x.astype(mm_dtype), ((0, B_p - B), (0, K_p - in_f)))

    grid = (B_p // tm, N_p // tn, K_p // tk)

    itemsize = jnp.dtype(mm_dtype).itemsize
    working_set = (
        2 * (tm * tk + tk * tn) * itemsize   # double-buffered x / W blocks
        + 2 * tm * tn * 4                    # double-buffered f32 output blocks
        + tm * tn * 4                        # f32 accumulator scratch
        + 2 * tn * 4                         # bias blocks
    )
    cap = _vmem_capacity_bytes()
    vmem_limit = int(min(max(2 * working_set, 32 * 1024 * 1024),
                         max(cap - 12 * 1024 * 1024, working_set + (4 << 20))))

    out_padded = pl.pallas_call(
        _fc_relu_kernel,
        out_shape=jax.ShapeDtypeStruct((B_p, N_p), jnp.float32),
        grid_spec=pltpu.PrefetchScalarGridSpec(
            num_scalar_prefetch=0,
            grid=grid,
            in_specs=[
                pl.BlockSpec((tm, tk), lambda i, j, k: (i, k)),  # x   [B_p, K_p]
                pl.BlockSpec((tk, tn), lambda i, j, k: (k, j)),  # W^T [K_p, N_p]
                pl.BlockSpec((1, tn), lambda i, j, k: (0, j)),   # bias
            ],
            out_specs=pl.BlockSpec((tm, tn), lambda i, j, k: (i, j)),
            scratch_shapes=[pltpu.VMEM((tm, tn), jnp.float32)],
        ),
        compiler_params=pltpu.CompilerParams(
            dimension_semantics=("parallel", "parallel", "arbitrary"),
            vmem_limit_bytes=vmem_limit,
        ),
    )(x_p, w_p, b_p)

    # Slice padded rows/cols back off (padded rows are relu(bias), discarded).
    return out_padded[:B, :out_f]


def fc_block(x, weight, bias, *, mm_dtype=jnp.bfloat16):
    """Convenience one-shot path. Prefer prepare_fc_params() once + apply."""
    w_p, b_p, meta = prepare_fc_params(weight, bias, mm_dtype=mm_dtype)
    return _fc_block_apply(x, w_p, b_p, **meta)


def fc_block_ref(x, weight, bias):
    return jnp.maximum(x @ weight.T + bias, 0.0)


if __name__ == "__main__":
    # Small shapes consistent with the module: batch=8, in_features=32, out_features=64.
    B, IN_F, OUT_F = 8, 32, 64

    key = jax.random.PRNGKey(0)
    kx, kw, kb = jax.random.split(key, 3)

    # Deterministic params (mimic PyTorch's uniform(-1/sqrt(in), 1/sqrt(in))).
    bound = 1.0 / jnp.sqrt(jnp.float32(IN_F))
    weight = jax.random.uniform(kw, (OUT_F, IN_F), jnp.float32, -bound, bound)
    bias = jax.random.uniform(kb, (OUT_F,), jnp.float32, -bound, bound)
    x = jax.random.normal(kx, (B, IN_F), jnp.float32)

    ref = fc_block_ref(x, weight, bias)

    # f32-operand path: tight match to the PyTorch-style reference.
    w32, b32, meta32 = prepare_fc_params(weight, bias, mm_dtype=jnp.float32)
    out_f32 = jax.block_until_ready(_fc_block_apply(x, w32, b32, **meta32))
    assert out_f32.shape == (B, OUT_F)
    assert jnp.allclose(out_f32, ref, atol=1e-5, rtol=1e-5), "mismatch vs reference (f32)"

    # Default path: bf16 operands prepared once in HBM, f32 accumulation.
    wbf, bbf, metabf = prepare_fc_params(weight, bias)  # mm_dtype=bf16
    out_bf16 = jax.block_until_ready(_fc_block_apply(x, wbf, bbf, **metabf))
    assert jnp.allclose(out_bf16, ref, atol=2e-2, rtol=2e-2), "mismatch vs reference (bf16)"

    # TODO(synk): the module's dropout arg is unused in forward and residual is
    # always False (`and False`), so no dropout / skip-add is implemented.
    print("KERNEL_OK")
</pallas_src>

<mosaic_0001>
module attributes {stable_mosaic.version = 11 : i64} {
  func.func @_fc_relu_kernel(%arg0: i32, %arg1: i32, %arg2: i32, %arg3: memref<8x128xf32, #tpu.memory_space<vmem>>, %arg4: memref<128x128xf32, #tpu.memory_space<vmem>>, %arg5: memref<1x128xf32, #tpu.memory_space<vmem>>, %arg6: memref<8x128xf32, #tpu.memory_space<vmem>>, %arg7: memref<8x128xf32, #tpu.memory_space<vmem>>) attributes {dimension_semantics = [#tpu.dimension_semantics<parallel>, #tpu.dimension_semantics<parallel>, #tpu.dimension_semantics<arbitrary>], iteration_bounds = array<i64: 1, 1, 1>, scalar_prefetch = 0 : i64, scratch_operands = 1 : i64, tpu.core_type = #tpu.core_type<tc>, window_params = [{transform_indices = @transform_0, window_bounds = array<i64: 8, 128>}, {transform_indices = @transform_1, window_bounds = array<i64: 128, 128>}, {transform_indices = @transform_2, window_bounds = array<i64: 1, 128>}, {transform_indices = @transform_3, window_bounds = array<i64: 8, 128>}]} {
    %c0_i32 = arith.constant 0 : i32
    %0 = arith.cmpi eq, %arg2, %c0_i32 : i32
    %1 = arith.extui %0 : i1 to i32
    %c0_i32_0 = arith.constant 0 : i32
    %2 = arith.cmpi ne, %1, %c0_i32_0 : i32
    scf.if %2 {
      %cst_10 = arith.constant 0.000000e+00 : f32
      %12 = vector.broadcast %cst_10 : f32 to vector<8x128xf32>
      %c0_11 = arith.constant 0 : index
      %c0_12 = arith.constant 0 : index
      %13 = vector.load %arg7[%c0_11, %c0_12] : memref<8x128xf32, #tpu.memory_space<vmem>>, vector<8x128xf32>
      tpu.vector_store %arg7[%c0_11, %c0_12], %12 {strides = array<i32>} : memref<8x128xf32, #tpu.memory_space<vmem>>, vector<8x128xf32>,
    } else {
    }
    %c0 = arith.constant 0 : index
    %c0_1 = arith.constant 0 : index
    %3 = vector.load %arg7[%c0, %c0_1] : memref<8x128xf32, #tpu.memory_space<vmem>>, vector<8x128xf32>
    %c0_2 = arith.constant 0 : index
    %c0_3 = arith.constant 0 : index
    %4 = vector.load %arg3[%c0_2, %c0_3] : memref<8x128xf32, #tpu.memory_space<vmem>>, vector<8x128xf32>
    %c0_4 = arith.constant 0 : index
    %c0_5 = arith.constant 0 : index
    %5 = vector.load %arg4[%c0_4, %c0_5] : memref<128x128xf32, #tpu.memory_space<vmem>>, vector<128x128xf32>
    %cst = arith.constant dense<0.000000e+00> : vector<8x128xf32>
    %6 = tpu.matmul %4, %5, %cst {dimension_numbers = #tpu.dot_dimension_numbers<[1], [0], [0], [1], [0, 0, 1, 1], [], []>} : vector<8x128xf32>, vector<128x128xf32>, vector<8x128xf32> -> vector<8x128xf32>
    %7 = arith.addf %3, %6 : vector<8x128xf32>
    %c0_6 = arith.constant 0 : index
    %c0_7 = arith.constant 0 : index
    %8 = vector.load %arg7[%c0_6, %c0_7] : memref<8x128xf32, #tpu.memory_space<vmem>>, vector<8x128xf32>
    tpu.vector_store %arg7[%c0_6, %c0_7], %7 {strides = array<i32>} : memref<8x128xf32, #tpu.memory_space<vmem>>, vector<8x128xf32>,
    %c0_i32_8 = arith.constant 0 : i32
    %9 = arith.cmpi eq, %arg2, %c0_i32_8 : i32
    %10 = arith.extui %9 : i1 to i32
    %c0_i32_9 = arith.constant 0 : i32
    %11 = arith.cmpi ne, %10, %c0_i32_9 : i32
    scf.if %11 {
      %c0_10 = arith.constant 0 : index
      %c0_11 = arith.constant 0 : index
      %12 = vector.load %arg7[%c0_10, %c0_11] : memref<8x128xf32, #tpu.memory_space<vmem>>, vector<8x128xf32>
      %c0_12 = arith.constant 0 : index
      %c0_13 = arith.constant 0 : index
      %13 = vector.load %arg5[%c0_12, %c0_13] : memref<1x128xf32, #tpu.memory_space<vmem>>, vector<1x128xf32>
      %14 = vector.broadcast %13 : vector<1x128xf32> to vector<8x128xf32>
      %15 = arith.addf %12, %14 : vector<8x128xf32>
      %cst_14 = arith.constant 0.000000e+00 : f32
      %16 = vector.broadcast %cst_14 : f32 to vector<8x128xf32>
      %17 = arith.maximumf %15, %16 : vector<8x128xf32>
      %c0_15 = arith.constant 0 : index
      %c0_16 = arith.constant 0 : index
      %18 = vector.load %arg6[%c0_15, %c0_16] : memref<8x128xf32, #tpu.memory_space<vmem>>, vector<8x128xf32>
      tpu.vector_store %arg6[%c0_15, %c0_16], %17 {strides = array<i32>} : memref<8x128xf32, #tpu.memory_space<vmem>>, vector<8x128xf32>,
    } else {
    }
    return
  }
  func.func @transform_0(%arg0: i32, %arg1: i32, %arg2: i32) -> (i32, i32) {
    %c0_i32 = arith.constant 0 : i32
    return %arg0, %arg2 : i32, i32
  }
  func.func @transform_1(%arg0: i32, %arg1: i32, %arg2: i32) -> (i32, i32) {
    %c0_i32 = arith.constant 0 : i32
    return %arg2, %arg1 : i32, i32
  }
  func.func @transform_2(%arg0: i32, %arg1: i32, %arg2: i32) -> (i32, i32) {
    %c0_i32 = arith.constant 0 : i32
    %c0_i32_0 = arith.constant 0 : i32
    return %c0_i32, %arg1 : i32, i32
  }
  func.func @transform_3(%arg0: i32, %arg1: i32, %arg2: i32) -> (i32, i32) {
    %c0_i32 = arith.constant 0 : i32
    return %arg0, %arg1 : i32, i32
  }
}

</mosaic_0001>

<bundles_post_ra>
// kernel: _fc_block_apply.1
= control target key start
LH: loop header
LB: loop body
LE: loop exit
PB: predicated region body
PF: predicated region fallthrough
CT: control target
= control target key end

     0   :  { %8 = vsyncpa [#allocation4], 0  ;;  %s294_s0 = inlined_call_operand.vmem [shape: f32[8,128], index: 0, kind: input, shape index: {}]   ;;  %s295_s1 = inlined_call_operand.hbm [shape: f32[128,128], index: 1, kind: input, shape index: {}]   ;;  %s296_s2 = inlined_call_operand.vmem [shape: f32[1,128], index: 2, kind: input, shape index: {}]   ;;  %s297_s3 = inlined_call_operand.hbm [shape: f32[8,128], index: 3, kind: output, shape index: {}]  }
   0x1   :  { %9 = vsyncpa [#allocation5], 0  ;;  %s256_s12 = smov [#allocation3]  }
   0x2   :  { %s17_s13 = sshll.u32 %s256_s12, 4  ;;  %s18_s13 = int_to_ptr.vmem [resolvable:$true] %s17_s13 }
   0x3   :  { %s220_s14 = scalar_lea.vmem %s18_s13, 2048  ;;  %p225_p1 = scmp.lt.s32.totalorder %s18_s13, %s18_s13 }
   0x4   :  { %p221_p0 = scmp.ne.s32.totalorder %s18_s13, %s220_s14  ;;  %p226_p2 = scmp.lt.s32.totalorder %s220_s14, %s220_s14 }
   0x6   :  { %p227_p3 = por %p226_p2, %p225_p1 }
   0x8   :  { %p228_p4 = pnand %p227_p3, %p221_p0 }
   0xa   :  { %231 = shalt.err (!%p228_p4)
}
   0xb   :  { %s257_s15 = smov 128   ;;  %s258_s16 = smov 8  }
   0xc   :  { %23 = dma.hbm_to_vmem [thread:$0]  %s295_s1, 2048, %s18_s13, [#allocation4], %s257_s15, %s257_s15, %s258_s16  }
   0xd   :  { %252 = dma.done.wait [#allocation4], 2048  }
   0xe   :  { %253 = vsyncadd [#allocation4], 4294965248  ;;  %v259_v0 = vmov 0.0   ;;  %vm260_vm0 = vmmov 0   ;;  %v51_v1 = vld [vmem:[#allocation3 + $0x78] sm:$0xff]  ;;  %v50_v2 = vld [vmem:[#allocation3 + $0x70] sm:$0xff] }
   0xf   :  { %171 = vmatprep.subr.mxu0 %v259_v0  ;;  %203 = vmatprep.mubr.msk.f32.mxu0 %vm260_vm0, %v259_v0  ;;  %v49_v3 = vld [vmem:[#allocation3 + $0x68] sm:$0xff]  ;;  %v48_v4 = vld [vmem:[#allocation3 + $0x60] sm:$0xff]  ;;  %v47_v5 = vld [vmem:[#allocation3 + $0x58] sm:$0xff]  ;;  %s261_s22 = smov [#allocation6]  }
  0x10   :  { %172 = vmatpush3.msra.mxu0 %v51_v1  ;;  %v46_v6 = vld [vmem:[#allocation3 + $0x50] sm:$0xff]  ;;  %v45_v7 = vld [vmem:[#allocation3 + $0x48] sm:$0xff]  ;;  %v44_v8 = vld [vmem:[#allocation3 + $0x40] sm:$0xff]  ;;  %s144_s23 = sshll.u32 %s261_s22, 4  ;;  %s145_s23 = int_to_ptr.vmem [resolvable:$true] %s144_s23 }
  0x11   :  { %173 = vmatprep.subr.mxu0 %v259_v0  ;;  %v43_v9 = vld [vmem:[#allocation3 + $0x38] sm:$0xff]  ;;  %v42_v10 = vld [vmem:[#allocation3 + $0x30] sm:$0xff]  ;;  %v41_v11 = vld [vmem:[#allocation3 + $0x28] sm:$0xff]  ;;  %s232_s24 = scalar_lea.vmem %s145_s23, 128  ;;  %p237_p6 = scmp.lt.s32.totalorder %s145_s23, %s145_s23 }
  0x12   :  { %174 = vmatpush3.msra.mxu0 %v50_v2  ;;  %v40_v12 = vld [vmem:[#allocation3 + $0x20] sm:$0xff]  ;;  %v39_v13 = vld [vmem:[#allocation3 + $0x18] sm:$0xff]  ;;  %v38_v14 = vld [vmem:[#allocation3 + $0x10] sm:$0xff]  ;;  %p233_p5 = scmp.ne.s32.totalorder %s145_s23, %s232_s24  ;;  %p238_p7 = scmp.lt.s32.totalorder %s232_s24, %s232_s24 }
  0x13   :  { %175 = vmatprep.subr.mxu0 %v259_v0  ;;  %v37_v15 = vld [vmem:[#allocation3 + $0x8] sm:$0xff]  ;;  %v36_v16 = vld [vmem:[#allocation3] sm:$0xff] }
  0x14   :  { %176 = vmatpush3.msra.mxu0 %v49_v3  ;;  %v35_v17 = vld [vmem:[%s294_s0] sm:$0xff]  ;;  %p239_p8 = por %p238_p7, %p237_p6 }
  0x15   :  { %177 = vmatprep.subr.mxu0 %v259_v0  ;;  %v153_v18 = vld [vmem:[%s296_s2] ss:$0 sm:$0xff] }
  0x16   :  { %178 = vmatpush3.msra.mxu0 %v48_v4  ;;  %p240_p9 = pnand %p239_p8, %p233_p5 }
  0x17   :  { %179 = vmatprep.subr.mxu0 %v259_v0 }
  0x18   :  { %180 = vmatpush3.msra.mxu0 %v47_v5 }
  0x19   :  { %181 = vmatprep.subr.mxu0 %v259_v0 }
  0x1a   :  { %182 = vmatpush3.msra.mxu0 %v46_v6 }
  0x1b   :  { %183 = vmatprep.subr.mxu0 %v259_v0 }
  0x1c   :  { %184 = vmatpush3.msra.mxu0 %v45_v7 }
  0x1d   :  { %185 = vmatprep.subr.mxu0 %v259_v0 }
  0x1e   :  { %186 = vmatpush3.msra.mxu0 %v44_v8 }
  0x1f   :  { %187 = vmatprep.subr.mxu0 %v259_v0 }
  0x20   :  { %188 = vmatpush3.msra.mxu0 %v43_v9 }
  0x21   :  { %189 = vmatprep.subr.mxu0 %v259_v0 }
  0x22   :  { %190 = vmatpush3.msra.mxu0 %v42_v10 }
  0x23   :  { %191 = vmatprep.subr.mxu0 %v259_v0 }
  0x24   :  { %192 = vmatpush3.msra.mxu0 %v41_v11 }
  0x25   :  { %193 = vmatprep.subr.mxu0 %v259_v0 }
  0x26   :  { %194 = vmatpush3.msra.mxu0 %v40_v12 }
  0x27   :  { %195 = vmatprep.subr.mxu0 %v259_v0 }
  0x28   :  { %196 = vmatpush3.msra.mxu0 %v39_v13 }
  0x29   :  { %197 = vmatprep.subr.mxu0 %v259_v0 }
  0x2a   :  { %198 = vmatpush3.msra.mxu0 %v38_v14 }
  0x2b   :  { %199 = vmatprep.subr.mxu0 %v259_v0 }
  0x2c   :  { %200 = vmatpush3.msra.mxu0 %v37_v15 }
  0x2d   :  { %201 = vmatprep.subr.mxu0 %v259_v0 }
  0x2e   :  { %202 = vmatpush3.msra.mxu0 %v36_v16 }
  0x2f   :  { %204 = vmatmul.mubr.f32.vlgmr.msra.gmra.mxu0 %v35_v17 }
  0xef   :  { %v118_v19 = vpop.f32.mrf.mxu0 }
  0xf0   :  { %v135_v20 = vadd.f32 %v153_v18, %v118_v19 }
  0xf1   :  { %v205_v21 = vpop.f32.mrf.mxu0 }
  0xf2   :  { %v136_v22 = vmax.f32 %v135_v20, 0.0 }
  0xf4   :  { %137 = vst [vmem:[#allocation6] sm:$0xff] %v136_v22 }
  0xf5   :  { %243 = shalt.err (!%p240_p9)
}
  0xf6   :  { %147 = dma.vmem_to_hbm [thread:$0]  %s145_s23, 128, %s297_s3, [#allocation5]  }
  0xf7   :  { %254 = dma.done.wait [#allocation5], 128  }
  0xf8   :  { %255 = vsyncadd [#allocation5], 4294967168 }
  0xf9   :  { %151 = vsyncpa [#allocation4], 1 }
  0xfa   :  { %152 = vsyncpa [#allocation5], 1 }

</bundles_post_ra>
